<compile_context>
chip_gen: v7x
topology: tpu7x:2x2x1
jax: 0.10.0
libtpu: 0.0.40
codegen_flags: <defaults>
</compile_context>

<pallas_src>
import functools

import jax
import jax.numpy as jnp
from jax import lax
from jax.experimental import pallas as pl
from jax.experimental.pallas import tpu as pltpu


def _round_up(x, m):
    return ((x + m - 1) // m) * m


def _sigmoid_linear_kernel(x_ref, w_ref, b_ref, o_ref, acc_ref):
    # x_ref:   (tm, tk)  activation tile (compute dtype, e.g. bf16)
    # w_ref:   (tk, tn)  pre-transposed weight tile [D_in, D_out] (compute dtype)
    # b_ref:   (1,  tn)  f32 bias tile
    # o_ref:   (tm, tn)  output tile (written on last K step only)
    # acc_ref: (tm, tn)  f32 accumulator, resident across the K grid axis
    k = pl.program_id(2)

    @pl.when(k == 0)
    def _():
        acc_ref[...] = jnp.zeros_like(acc_ref)

    # Plain matmul contraction: (tm, tk) @ (tk, tn) -> no in-kernel transpose.
    acc_ref[...] += lax.dot_general(
        x_ref[...], w_ref[...],
        dimension_numbers=(((1,), (0,)), ((), ())),
        preferred_element_type=jnp.float32,
    )

    @pl.when(k == pl.num_programs(2) - 1)
    def _():
        z = acc_ref[...] + b_ref[...]                 # f32 epilogue
        o_ref[...] = jax.nn.sigmoid(z).astype(o_ref.dtype)


def _sigmoid_linear_kernel_1k(x_ref, w_ref, b_ref, o_ref):
    # Single-K fast path: no scratch accumulator, fused dot + bias + sigmoid.
    z = lax.dot_general(
        x_ref[...], w_ref[...],
        dimension_numbers=(((1,), (0,)), ((), ())),
        preferred_element_type=jnp.float32,
    ) + b_ref[...]
    o_ref[...] = jax.nn.sigmoid(z).astype(o_ref.dtype)


def make_sigmoid_linear(weight, bias, *, tm=512, tn=512, tk=512,
                        compute_dtype=jnp.bfloat16):
    """One-time parameter prep (transpose + pad + cast), returns apply(x).

    weight: [D_out, D_in]  (PyTorch nn.Linear layout)
    bias:   [D_out]
    Returned apply(x) computes sigmoid(x @ weight.T + bias) for x: [B, D_in].
    """
    D_out, D_in = weight.shape
    cdt = jnp.dtype(compute_dtype)
    m_align = max(8, 32 // cdt.itemsize)          # 8 for f32, 16 for bf16, 32 for i8

    # Clamp N/K tiles to the (128-aligned) problem; keep them lane-dense.
    tn = min(tn, _round_up(D_out, 128))
    tk = min(tk, _round_up(D_in, 128))
    Np = _round_up(D_out, tn)
    Kp = _round_up(D_in, tk)

    # --- one-time relayout (amortized across all calls) ----------------------
    w_t = jnp.pad(weight.T, ((0, Kp - D_in), (0, Np - D_out))).astype(cdt)   # [Kp, Np]
    b_p = jnp.pad(bias.astype(jnp.float32), (0, Np - D_out)).reshape(1, Np)  # [1, Np]

    def apply(x):
        B, d = x.shape
        assert d == D_in, "x / weight inner-dim mismatch"
        out_dtype = x.dtype

        tm_c = min(tm, _round_up(B, m_align))
        Bp = _round_up(B, tm_c)

        # Keep >= 2 parallel (i, j) tiles when cheap, so v7x's two TCs get work.
        if (Bp // tm_c) * (Np // tn) < 2 and tm_c % (2 * m_align) == 0:
            tm_c //= 2

        xp = x.astype(cdt)
        if Bp != B or Kp != D_in:
            xp = jnp.pad(xp, ((0, Bp - B), (0, Kp - D_in)))

        n_k = Kp // tk
        common = dict(
            out_shape=jax.ShapeDtypeStruct((Bp, Np), out_dtype),
            compiler_params=pltpu.CompilerParams(
                # Stay under ~48 MiB of v7x's 64 MiB per-TC VMEM; trivially fits
                # v5e/v6e's 128 MiB.  bf16 512x512 tiles double-buffered ~ 5 MiB.
                vmem_limit_bytes=48 * 1024 * 1024,
            ),
        )

        if n_k == 1:
            # K==1 fast path: 2-D grid, no accumulator scratch.
            out = pl.pallas_call(
                _sigmoid_linear_kernel_1k,
                grid_spec=pltpu.PrefetchScalarGridSpec(
                    num_scalar_prefetch=0,
                    grid=(Bp // tm_c, Np // tn),
                    in_specs=[
                        pl.BlockSpec((tm_c, tk), lambda i, j: (i, 0)),
                        pl.BlockSpec((tk, tn), lambda i, j: (0, j)),
                        pl.BlockSpec((1, tn), lambda i, j: (0, j)),
                    ],
                    out_specs=pl.BlockSpec((tm_c, tn), lambda i, j: (i, j)),
                ),
                out_shape=common["out_shape"],
                compiler_params=pltpu.CompilerParams(
                    dimension_semantics=("parallel", "parallel"),
                    vmem_limit_bytes=48 * 1024 * 1024,
                ),
            )(xp, w_t, b_p)
        else:
            out = pl.pallas_call(
                _sigmoid_linear_kernel,
                grid_spec=pltpu.PrefetchScalarGridSpec(
                    num_scalar_prefetch=0,
                    grid=(Bp // tm_c, Np // tn, n_k),
                    in_specs=[
                        pl.BlockSpec((tm_c, tk), lambda i, j, k: (i, k)),  # x
                        pl.BlockSpec((tk, tn), lambda i, j, k: (k, j)),    # W^T (pre-transposed)
                        pl.BlockSpec((1, tn), lambda i, j, k: (0, j)),     # bias
                    ],
                    out_specs=pl.BlockSpec((tm_c, tn), lambda i, j, k: (i, j)),
                    scratch_shapes=[pltpu.VMEM((tm_c, tn), jnp.float32)],
                ),
                out_shape=common["out_shape"],
                compiler_params=pltpu.CompilerParams(
                    dimension_semantics=("parallel", "parallel", "arbitrary"),
                    vmem_limit_bytes=48 * 1024 * 1024,
                ),
            )(xp, w_t, b_p)

        return out[:B, :D_out]

    return apply


def sigmoid_linear(x, weight, bias, **kwargs):
    """Convenience one-shot wrapper (prefer make_sigmoid_linear to amortize the
    one-time weight relayout across calls)."""
    return make_sigmoid_linear(weight, bias, **kwargs)(x)


if __name__ == "__main__":
    key = jax.random.PRNGKey(0)
    k_x, k_w, k_b, k_x2, k_w2, k_b2 = jax.random.split(key, 6)

    # --- Case 1: module-scale shape, single-K fast path, bf16 compute --------
    batch, input_dim, output_dim = 8, 32, 16
    x = jax.random.normal(k_x, (batch, input_dim), dtype=jnp.float32)
    # The PyTorch module zeroes the weight at init; use a NONZERO weight here so
    # the matmul path is actually exercised (forward semantics are identical).
    weight = 0.01 * jax.random.normal(
        k_w, (output_dim, input_dim), dtype=jnp.float32)
    bound = 1.0 / jnp.sqrt(jnp.float32(input_dim))
    bias = jax.random.uniform(k_b, (output_dim,), jnp.float32, -bound, bound)

    apply_fn = make_sigmoid_linear(weight, bias)           # one-time param prep
    out = apply_fn(x)
    jax.block_until_ready(out)
    ref = jax.nn.sigmoid(x @ weight.T + bias)
    assert out.shape == (batch, output_dim)
    assert jnp.allclose(out, ref, atol=2e-2), "mismatch vs reference (bf16, small)"

    # --- Case 2: multi-tile grid with real K accumulation (bf16 compute) -----
    B2, D_in2, D_out2 = 128, 384, 256
    x2 = jax.random.normal(k_x2, (B2, D_in2), dtype=jnp.float32)
    w2 = 0.05 * jax.random.normal(k_w2, (D_out2, D_in2), dtype=jnp.float32)
    b2 = jax.random.uniform(k_b2, (D_out2,), jnp.float32, -0.1, 0.1)
    ref2 = jax.nn.sigmoid(x2 @ w2.T + b2)

    out2 = sigmoid_linear(x2, w2, b2, tm=64, tn=128, tk=128)   # grid (2, 2, 3)
    jax.block_until_ready(out2)
    assert jnp.allclose(out2, ref2, atol=2e-2), "mismatch vs reference (bf16, tiled)"

    # --- Case 3: same problem in exact f32 compute (tight tolerance) ---------
    out3 = sigmoid_linear(x2, w2, b2, tm=64, tn=128, tk=128,
                          compute_dtype=jnp.float32)
    jax.block_until_ready(out3)
    assert jnp.allclose(out3, ref2, atol=1e-5), "mismatch vs reference (f32, tiled)"

    print("KERNEL_OK")
</pallas_src>

<mosaic_0001>
module attributes {stable_mosaic.version = 11 : i64} {
  func.func @_sigmoid_linear_kernel_1k(%arg0: i32, %arg1: i32, %arg2: memref<16x128xbf16, #tpu.memory_space<vmem>>, %arg3: memref<128x128xbf16, #tpu.memory_space<vmem>>, %arg4: memref<1x128xf32, #tpu.memory_space<vmem>>, %arg5: memref<16x128xf32, #tpu.memory_space<vmem>>) attributes {dimension_semantics = [#tpu.dimension_semantics<parallel>, #tpu.dimension_semantics<parallel>], iteration_bounds = array<i64: 1, 1>, scalar_prefetch = 0 : i64, scratch_operands = 0 : i64, tpu.core_type = #tpu.core_type<tc>, window_params = [{transform_indices = @transform_0, window_bounds = array<i64: 16, 128>}, {transform_indices = @transform_1, window_bounds = array<i64: 128, 128>}, {transform_indices = @transform_2, window_bounds = array<i64: 1, 128>}, {transform_indices = @transform_3, window_bounds = array<i64: 16, 128>}]} {
    %c0 = arith.constant 0 : index
    %c0_0 = arith.constant 0 : index
    %0 = vector.load %arg2[%c0, %c0_0] : memref<16x128xbf16, #tpu.memory_space<vmem>>, vector<16x128xbf16>
    %c0_1 = arith.constant 0 : index
    %c0_2 = arith.constant 0 : index
    %1 = vector.load %arg3[%c0_1, %c0_2] : memref<128x128xbf16, #tpu.memory_space<vmem>>, vector<128x128xbf16>
    %cst = arith.constant dense<0.000000e+00> : vector<16x128xf32>
    %2 = tpu.matmul %0, %1, %cst {dimension_numbers = #tpu.dot_dimension_numbers<[1], [0], [0], [1], [0, 0, 1, 1], [], []>} : vector<16x128xbf16>, vector<128x128xbf16>, vector<16x128xf32> -> vector<16x128xf32>
    %c0_3 = arith.constant 0 : index
    %c0_4 = arith.constant 0 : index
    %3 = vector.load %arg4[%c0_3, %c0_4] : memref<1x128xf32, #tpu.memory_space<vmem>>, vector<1x128xf32>
    %4 = vector.broadcast %3 : vector<1x128xf32> to vector<16x128xf32>
    %5 = arith.addf %2, %4 : vector<16x128xf32>
    %6 = arith.negf %5 : vector<16x128xf32>
    %7 = math.exp %6 : vector<16x128xf32>
    %cst_5 = arith.constant 1.000000e+00 : f32
    %8 = vector.broadcast %cst_5 : f32 to vector<16x128xf32>
    %9 = arith.addf %8, %7 : vector<16x128xf32>
    %10 = arith.divf %8, %9 : vector<16x128xf32>
    %c0_6 = arith.constant 0 : index
    %c0_7 = arith.constant 0 : index
    %11 = vector.load %arg5[%c0_6, %c0_7] : memref<16x128xf32, #tpu.memory_space<vmem>>, vector<16x128xf32>
    tpu.vector_store %arg5[%c0_6, %c0_7], %10 {strides = array<i32>} : memref<16x128xf32, #tpu.memory_space<vmem>>, vector<16x128xf32>,
    return
  }
  func.func @transform_0(%arg0: i32, %arg1: i32) -> (i32, i32) {
    %c0_i32 = arith.constant 0 : i32
    %c0_i32_0 = arith.constant 0 : i32
    return %arg0, %c0_i32 : i32, i32
  }
  func.func @transform_1(%arg0: i32, %arg1: i32) -> (i32, i32) {
    %c0_i32 = arith.constant 0 : i32
    %c0_i32_0 = arith.constant 0 : i32
    return %c0_i32, %arg1 : i32, i32
  }
  func.func @transform_2(%arg0: i32, %arg1: i32) -> (i32, i32) {
    %c0_i32 = arith.constant 0 : i32
    %c0_i32_0 = arith.constant 0 : i32
    return %c0_i32, %arg1 : i32, i32
  }
  func.func @transform_3(%arg0: i32, %arg1: i32) -> (i32, i32) {
    %c0_i32 = arith.constant 0 : i32
    return %arg0, %arg1 : i32, i32
  }
}

</mosaic_0001>

<bundles_post_ra>
// kernel: tpu_custom_call.1
= control target key start
LH: loop header
LB: loop body
LE: loop exit
PB: predicated region body
PF: predicated region fallthrough
CT: control target
= control target key end

     0   :  { %8 = vsyncpa [#allocation3], 0  ;;  %s403_s0 = inlined_call_operand.hbm [shape: bf16[16,128], index: 0, kind: input, shape index: {}]   ;;  %s404_s1 = inlined_call_operand.hbm [shape: bf16[128,128], index: 1, kind: input, shape index: {}]   ;;  %s405_s2 = inlined_call_operand.vmem [shape: f32[1,128], index: 2, kind: input, shape index: {}]   ;;  %s406_s3 = inlined_call_operand.hbm [shape: f32[16,128], index: 3, kind: output, shape index: {}]  }
   0x1   :  { %9 = vsyncpa [#allocation6], 0 }
   0x2   :  { %10 = vsyncpa [#allocation4], 0  ;;  %s335_s12 = smov [#allocation2]   ;;  %s263_s16 = scalar_lea.hbm %s403_s0, 128 }
   0x3   :  { %s16_s13 = sshll.u32 %s335_s12, 4  ;;  %p264_p0 = scmp.ne.s32.totalorder %s403_s0, %s263_s16  ;;  %s17_s13 = int_to_ptr.vmem [resolvable:$true] %s16_s13 }
   0x4   :  { %p267_p1 = scmp.lt.u32.totalorder %s263_s16, %s403_s0 }
   0x6   :  { %p269_p2 = pnand %p267_p1, %p264_p0 }
   0x8   :  { %272 = shalt.err (!%p269_p2)
}
   0x9   :  { %s273_s21 = scalar_lea.vmem %s17_s13, 128  ;;  %p278_p4 = scmp.lt.s32.totalorder %s17_s13, %s17_s13 }
   0xa   :  { %p274_p3 = scmp.ne.s32.totalorder %s17_s13, %s273_s21  ;;  %p279_p5 = scmp.lt.s32.totalorder %s273_s21, %s273_s21 }
   0xc   :  { %p280_p6 = por %p279_p5, %p278_p4 }
   0xe   :  { %p281_p7 = pnand %p280_p6, %p274_p3 }
  0x10   :  { %284 = shalt.err (!%p281_p7)
}
  0x11   :  { %s336_s22 = smov 64   ;;  %s337_s23 = smov 4  }
  0x12   :  { %22 = dma.hbm_to_vmem [thread:$0]  %s403_s0, 128, %s17_s13, [#allocation3], %s336_s22, %s336_s22, %s337_s23  }
  0x13   :  { %s338_s26 = smov [#allocation5]   ;;  %s285_s30 = scalar_lea.hbm %s404_s1, 1024 }
  0x14   :  { %s28_s27 = sshll.u32 %s338_s26, 4  ;;  %p286_p8 = scmp.ne.s32.totalorder %s404_s1, %s285_s30  ;;  %s29_s27 = int_to_ptr.vmem [resolvable:$true] %s28_s27 }
  0x15   :  { %p289_p9 = scmp.lt.u32.totalorder %s285_s30, %s404_s1 }
  0x17   :  { %p291_p10 = pnand %p289_p9, %p286_p8 }
  0x19   :  { %294 = shalt.err (!%p291_p10)
}
  0x1a   :  { %s295_s8 = scalar_lea.vmem %s29_s27, 1024  ;;  %p300_p12 = scmp.lt.s32.totalorder %s29_s27, %s29_s27 }
  0x1b   :  { %p296_p11 = scmp.ne.s32.totalorder %s29_s27, %s295_s8  ;;  %p301_p13 = scmp.lt.s32.totalorder %s295_s8, %s295_s8 }
  0x1d   :  { %p302_p0 = por %p301_p13, %p300_p12 }
  0x1f   :  { %p303_p1 = pnand %p302_p0, %p296_p11 }
  0x21   :  { %306 = shalt.err (!%p303_p1)
}
  0x22   :  { %34 = dma.hbm_to_vmem [thread:$0]  %s404_s1, 1024, %s29_s27, [#allocation6], %s336_s22, %s336_s22, %s337_s23  }
  0x23   :  { %329 = dma.done.wait [#allocation3], 128  }
  0x24   :  { %330 = vsyncadd [#allocation3], 4294967168 }
  0x25   :  { %331 = dma.done.wait [#allocation6], 1024  }
  0x26   :  { %332 = vsyncadd [#allocation6], 4294966272  ;;  %v339_v0 = vmov 0.0   ;;  %vm340_vm0 = vmmov 0   ;;  %v246_v1 = vld [vmem:[#allocation5] sm:$0xff]   ;;  %v247_v2 = vld [vmem:[#allocation5 + $0x8] sm:$0xff]  }
  0x27   :  { %217 = vmatprep.subr.bf16.mxu0 %v339_v0  ;;  %233 = vmatprep.mubr.msk.bf16.mxu0 %vm340_vm0, %v339_v0  ;;  %v248_v3 = vld [vmem:[#allocation5 + $0x10] sm:$0xff]   ;;  %v249_v4 = vld [vmem:[#allocation5 + $0x18] sm:$0xff]   ;;  %v250_v5 = vld [vmem:[#allocation5 + $0x20] sm:$0xff]   ;;  %s341_s11 = smov [#allocation7]  }
  0x28   :  { %218 = vmatpush3.bf16.msra.mxu0 %v246_v1  ;;  %v251_v6 = vld [vmem:[#allocation5 + $0x28] sm:$0xff]   ;;  %v252_v7 = vld [vmem:[#allocation5 + $0x30] sm:$0xff]   ;;  %v253_v8 = vld [vmem:[#allocation5 + $0x38] sm:$0xff]   ;;  %s183_s12 = sshll.u32 %s341_s11, 4  ;;  %s184_s12 = int_to_ptr.vmem [resolvable:$true] %s183_s12 }
  0x29   :  { %219 = vmatprep.subr.bf16.mxu0 %v339_v0  ;;  %v254_v9 = vld [vmem:[#allocation2] sm:$0xff]   ;;  %p312_p3 = scmp.lt.s32.totalorder %s184_s12, %s184_s12 }
  0x2a   :  { %v196_v10 = vld [vmem:[%s405_s2] ss:$0 sm:$0xff]  ;;  %s307_s2 = scalar_lea.vmem %s184_s12, 256 }
  0x2b   :  { %p308_p2 = scmp.ne.s32.totalorder %s184_s12, %s307_s2  ;;  %p313_p4 = scmp.lt.s32.totalorder %s307_s2, %s307_s2 }
  0x2c   :  { %220 = vmatpush3.bf16.msra.mxu0 %v247_v2 }
  0x2d   :  { %221 = vmatprep.subr.bf16.mxu0 %v339_v0  ;;  %p314_p5 = por %p313_p4, %p312_p3 }
  0x2f   :  { %p315_p6 = pnand %p314_p5, %p308_p2 }
  0x30   :  { %222 = vmatpush3.bf16.msra.mxu0 %v248_v3 }
  0x31   :  { %223 = vmatprep.subr.bf16.mxu0 %v339_v0 }
  0x34   :  { %224 = vmatpush3.bf16.msra.mxu0 %v249_v4 }
  0x35   :  { %225 = vmatprep.subr.bf16.mxu0 %v339_v0 }
  0x38   :  { %226 = vmatpush3.bf16.msra.mxu0 %v250_v5 }
  0x39   :  { %227 = vmatprep.subr.bf16.mxu0 %v339_v0 }
  0x3c   :  { %228 = vmatpush3.bf16.msra.mxu0 %v251_v6 }
  0x3d   :  { %229 = vmatprep.subr.bf16.mxu0 %v339_v0 }
  0x40   :  { %230 = vmatpush3.bf16.msra.mxu0 %v252_v7 }
  0x41   :  { %231 = vmatprep.subr.bf16.mxu0 %v339_v0 }
  0x44   :  { %232 = vmatpush3.bf16.msra.mxu0 %v253_v8 }
  0x47   :  { %234 = vmatmul.mubr.bf16.vlgmr.msra.gmra.mrb[0].mxu0 %v254_v9 }
 0x11a   :  { %v157_v11 = vpop.f32.mrb[0].mxu0 }
 0x11b   :  { %v158_v12 = vadd.f32 %v196_v10, %v157_v11  ;;  %v235_v13 = vpop.f32.mrb[1].mxu0 }
 0x11c   :  { %v160_v14 = vpop.f32.mrb[2].mxu0 }
 0x11d   :  { %v206_v15 = vmul.f32 -1.442695, %v158_v12  ;;  %v161_v16 = vadd.f32 %v196_v10, %v160_v14  ;;  %v236_v17 = vpop.f32.mrb[3].mxu0 }
 0x11f   :  { %255 = vpow2.f32 %v206_v15  ;;  %v207_v18 = vmul.f32 -1.442695, %v161_v16 }
 0x121   :  { %257 = vpow2.f32 %v207_v18 }
 0x129   :  { %v256_v19 = vpop.eup %255 }
 0x12a   :  { %v170_v20 = vadd.f32 1.0, %v256_v19 }
 0x12b   :  { %v258_v21 = vpop.eup %257 }
 0x12c   :  { %259 = vrcp.f32 %v170_v20  ;;  %v171_v22 = vadd.f32 1.0, %v258_v21 }
 0x12e   :  { %261 = vrcp.f32 %v171_v22 }
 0x136   :  { %v260_v23 = vpop.eup %259 }
 0x137   :  { %176 = vst [vmem:[#allocation7] sm:$0xff] %v260_v23 }
 0x138   :  { %v262_v24 = vpop.eup %261 }
 0x139   :  { %177 = vst [vmem:[#allocation7 + $0x8] sm:$0xff] %v262_v24 }
 0x13a   :  { %318 = shalt.err (!%p315_p6)
}
 0x13b   :  { %s319_s15 = scalar_lea.hbm %s406_s3, 256 }
 0x13c   :  { %p320_p7 = scmp.ne.s32.totalorder %s406_s3, %s319_s15  ;;  %p323_p8 = scmp.lt.u32.totalorder %s319_s15, %s406_s3 }
 0x13e   :  { %p325_p9 = pnand %p323_p8, %p320_p7 }
 0x140   :  { %328 = shalt.err (!%p325_p9)
}
 0x141   :  { %s342_s20 = smov 128   ;;  %s343_s21 = smov 8  }
 0x142   :  { %189 = dma.vmem_to_hbm [thread:$0]  %s184_s12, 256, %s406_s3, [#allocation4], %s342_s20, %s342_s20, %s343_s21  }
 0x143   :  { %333 = dma.done.wait [#allocation4], 256  }
 0x144   :  { %334 = vsyncadd [#allocation4], 4294967040 }
 0x145   :  { %193 = vsyncpa [#allocation3], 1 }
 0x146   :  { %194 = vsyncpa [#allocation6], 1 }
 0x147   :  { %195 = vsyncpa [#allocation4], 1 }

</bundles_post_ra>
